<compile_context>
chip_gen: v5e
topology: v5e:2x2
jax: 0.10.0
libtpu: 0.0.40
codegen_flags: <defaults>
</compile_context>

<pallas_src>
import jax
import jax.numpy as jnp
from jax.experimental import pallas as pl
from jax.experimental.pallas import tpu as pltpu

LANE = 128


def _round_up(n, m):
    return (n + m - 1) // m * m


def _cdiv(a, b):
    return -(-a // b)


# ----------------------------------------------------------------------------
# Kernel
# ----------------------------------------------------------------------------
def mlp_kernel(x_ref, w1_ref, b1_ref, w2_ref, b2_ref, w3_ref, b3_ref, o_ref):
    # Three MXU matmuls (bf16 in, f32 acc) + VPU bias/ReLU in f32, all in VMEM.
    x = x_ref[...].astype(jnp.bfloat16)                                   # (tb, inp_p)
    h1 = jnp.dot(x, w1_ref[...], preferred_element_type=jnp.float32) + b1_ref[...]
    h1 = jnp.maximum(h1, 0.0).astype(jnp.bfloat16)                        # (tb, hid_p)
    h2 = jnp.dot(h1, w2_ref[...], preferred_element_type=jnp.float32) + b2_ref[...]
    h2 = jnp.maximum(h2, 0.0).astype(jnp.bfloat16)                        # (tb, hid_p)
    out = jnp.dot(h2, w3_ref[...], preferred_element_type=jnp.float32) + b3_ref[...]
    o_ref[...] = out.astype(o_ref.dtype)                                  # (tb, out_p) bf16, lane-dense


# ----------------------------------------------------------------------------
# One-time parameter preparation (pad + cast, hoisted out of the forward path)
# ----------------------------------------------------------------------------
def _pad2(a, rows, cols, dtype):
    a = a.astype(dtype)
    return jnp.pad(a, ((0, rows - a.shape[0]), (0, cols - a.shape[1])))


def prepare_params(params):
    """Pad weights/biases to lane-dense shapes and cast weights to bf16 ONCE.

    Zero padding is exact: padded input columns hit zero weight rows, padded
    hidden columns get bias 0 -> relu(0) = 0, padded output columns are sliced
    off in the wrapper.
    """
    w1, b1, w2, b2, w3, b3 = (params["w1"], params["b1"], params["w2"],
                              params["b2"], params["w3"], params["b3"])
    inp_dim, hid = w1.shape
    out_dim = w3.shape[1]

    inp_p = _round_up(inp_dim, LANE)
    hid_p = _round_up(hid, LANE)
    out_p = _round_up(out_dim, LANE)
    # TODO(synk): for large hid on v6e/v7x round hid_p to 256 to fill the 2x256x256 MXU.

    prepared = {
        "w1": _pad2(w1, inp_p, hid_p, jnp.bfloat16),
        "w2": _pad2(w2, hid_p, hid_p, jnp.bfloat16),
        "w3": _pad2(w3, hid_p, out_p, jnp.bfloat16),
        "b1": _pad2(b1, 1, hid_p, jnp.float32),
        "b2": _pad2(b2, 1, hid_p, jnp.float32),
        "b3": _pad2(b3, 1, out_p, jnp.float32),
        "dims": (inp_dim, hid, out_dim, inp_p, hid_p, out_p),
    }
    prepared = {k: (jax.block_until_ready(v) if k != "dims" else v)
                for k, v in prepared.items()}
    return prepared


# ----------------------------------------------------------------------------
# Forward wrapper
# ----------------------------------------------------------------------------
def _vmem_ceiling_bytes():
    """~80% of physical per-TC VMEM: ≈51 MiB on v7x (64 MiB), ≈102 MiB on v5e/v6e (128 MiB)."""
    try:
        cap = getattr(pltpu.get_tpu_info(), "vmem_capacity_bytes", None)
    except Exception:
        cap = None
    if not cap:
        cap = 64 * 2**20  # conservative default (v7x-sized)
    return int(cap * 0.8)


def _choose_batch_tile(B, tb_cap=512, align=16, large_B=1024):
    # >=2 tiles for big batches so the parallel grid axis can shard across v7x's 2 TCs.
    n_tiles = max(_cdiv(B, tb_cap), 2 if B >= large_B else 1)
    return _round_up(_cdiv(B, n_tiles), align)


def mlp_forward(x, prepared, *, tb=None):
    """x: (B, inp_dim) f32. prepared: output of prepare_params(). Returns (B, out_dim) f32."""
    inp_dim, hid, out_dim, inp_p, hid_p, out_p = prepared["dims"]
    B = x.shape[0]
    assert x.shape[1] == inp_dim

    if tb is None:
        tb = _choose_batch_tile(B)
    B_p = _round_up(B, tb)

    # Pad x (f32) only if needed; the bf16 cast happens inside the kernel.
    xp = x.astype(jnp.float32)
    if B_p != B or inp_p != inp_dim:
        xp = jnp.pad(xp, ((0, B_p - B), (0, inp_p - inp_dim)))

    # VMEM budget (conservative: assumes double-buffered weights).
    w_bytes = (inp_p * hid_p + hid_p * hid_p + hid_p * out_p) * 2
    b_bytes = (2 * hid_p + out_p) * 4
    io_bytes = 2 * (tb * inp_p * 4 + tb * out_p * 2)              # x f32, out bf16, 2 buffers
    inter_bytes = 4 * tb * hid_p * 4                              # f32/bf16 intermediates + slack
    est = 2 * (w_bytes + b_bytes) + io_bytes + inter_bytes
    vmem_limit = int(min(_vmem_ceiling_bytes(), max(16 * 2**20, 2 * est)))

    grid = (B_p // tb,)
    full = lambda i: (0, 0)  # weights/biases: same full block every grid step

    flops = 2 * B_p * (inp_p * hid_p + hid_p * hid_p + hid_p * out_p)
    bytes_accessed = (B_p * inp_p * 4 + w_bytes + b_bytes + B_p * out_p * 2)
    cost = pl.CostEstimate(flops=flops, transcendentals=0, bytes_accessed=bytes_accessed)

    def _call(weight_mode):
        wspec = lambda shape: pl.BlockSpec(shape, full, pipeline_mode=weight_mode)
        return pl.pallas_call(
            mlp_kernel,
            out_shape=jax.ShapeDtypeStruct((B_p, out_p), jnp.bfloat16),
            grid_spec=pltpu.PrefetchScalarGridSpec(
                num_scalar_prefetch=0,
                grid=grid,
                in_specs=[
                    pl.BlockSpec((tb, inp_p), lambda i: (i, 0)),   # x tile over batch (f32)
                    wspec((inp_p, hid_p)),                         # w1 (bf16, resident)
                    wspec((1, hid_p)),                             # b1 (f32)
                    wspec((hid_p, hid_p)),                         # w2
                    wspec((1, hid_p)),                             # b2
                    wspec((hid_p, out_p)),                         # w3
                    wspec((1, out_p)),                             # b3
                ],
                out_specs=pl.BlockSpec((tb, out_p), lambda i: (i, 0)),
            ),
            compiler_params=pltpu.CompilerParams(
                dimension_semantics=("parallel",),
                vmem_limit_bytes=vmem_limit),
            cost_estimate=cost,
        )(xp, prepared["w1"], prepared["b1"], prepared["w2"], prepared["b2"],
          prepared["w3"], prepared["b3"])

    # Prefer single-buffered constant weight blocks; fall back to default buffering
    # if this JAX/Mosaic build rejects Buffered(1).
    try:
        out_padded = _call(pl.Buffered(1))
    except Exception:
        out_padded = _call(None)

    return out_padded[:B, :out_dim].astype(jnp.float32)


# ----------------------------------------------------------------------------
# Parameter init + references
# ----------------------------------------------------------------------------
def init_params(key, inp_dim, hid=32, out_dim=2):
    """Deterministic init. Weights stored as (in, out) = PyTorch weight.T."""
    k1, k2, k3, k4, k5, k6 = jax.random.split(key, 6)

    def lin(kw, kb, fan_in, fan_out):
        bound = 1.0 / jnp.sqrt(fan_in)
        w = jax.random.uniform(kw, (fan_in, fan_out), jnp.float32, -bound, bound)
        b = jax.random.uniform(kb, (1, fan_out), jnp.float32, -bound, bound)
        return w, b

    w1, b1 = lin(k1, k2, inp_dim, hid)
    w2, b2 = lin(k3, k4, hid, hid)
    w3, b3 = lin(k5, k6, hid, out_dim)
    return {"w1": w1, "b1": b1, "w2": w2, "b2": b2, "w3": w3, "b3": b3}


def mlp_reference_f32(x, p):
    h1 = jnp.maximum(x @ p["w1"] + p["b1"], 0.0)
    h2 = jnp.maximum(h1 @ p["w2"] + p["b2"], 0.0)
    return h2 @ p["w3"] + p["b3"]


def mlp_reference_bf16(x, p):
    """Emulates the kernel's bf16-in / f32-accumulate / bf16-out numerics."""
    bf = jnp.bfloat16
    h1 = jnp.maximum(
        jnp.dot(x.astype(bf), p["w1"].astype(bf), preferred_element_type=jnp.float32) + p["b1"], 0.0)
    h2 = jnp.maximum(
        jnp.dot(h1.astype(bf), p["w2"].astype(bf), preferred_element_type=jnp.float32) + p["b2"], 0.0)
    out = jnp.dot(h2.astype(bf), p["w3"].astype(bf), preferred_element_type=jnp.float32) + p["b3"]
    return out.astype(bf).astype(jnp.float32)


if __name__ == "__main__":
    key = jax.random.PRNGKey(0)
    kx, kp = jax.random.split(key)

    B, inp_dim, hid = 16, 16, 32
    x = jax.random.normal(kx, (B, inp_dim), dtype=jnp.float32)
    params = init_params(kp, inp_dim, hid=hid, out_dim=2)

    prepared = prepare_params(params)          # one-time pad + bf16 cast
    out = mlp_forward(x, prepared)
    out = jax.block_until_ready(out)
    assert out.shape == (B, 2)

    # Tight check vs. a reference with matching bf16-in / f32-acc / bf16-out numerics.
    ref_bf16 = mlp_reference_bf16(x, params)
    assert jnp.allclose(out, ref_bf16, atol=2e-2, rtol=2e-2), \
        f"bf16-emulated mismatch: {jnp.max(jnp.abs(out - ref_bf16))}"

    # Loose check vs. the pure-f32 reference (bf16 quantization error expected).
    ref_f32 = mlp_reference_f32(x, params)
    assert jnp.allclose(out, ref_f32, atol=7e-2, rtol=7e-2), \
        f"f32 reference mismatch: {jnp.max(jnp.abs(out - ref_f32))}"

    print("KERNEL_OK")
</pallas_src>

<mosaic_0001>
module attributes {stable_mosaic.version = 11 : i64} {
  func.func @mlp_kernel(%arg0: i32, %arg1: memref<16x128xf32, #tpu.memory_space<vmem>>, %arg2: memref<128x128xbf16, #tpu.memory_space<vmem>>, %arg3: memref<1x128xf32, #tpu.memory_space<vmem>>, %arg4: memref<128x128xbf16, #tpu.memory_space<vmem>>, %arg5: memref<1x128xf32, #tpu.memory_space<vmem>>, %arg6: memref<128x128xbf16, #tpu.memory_space<vmem>>, %arg7: memref<1x128xf32, #tpu.memory_space<vmem>>, %arg8: memref<16x128xbf16, #tpu.memory_space<vmem>>) attributes {dimension_semantics = [#tpu.dimension_semantics<parallel>], iteration_bounds = array<i64: 1>, scalar_prefetch = 0 : i64, scratch_operands = 0 : i64, tpu.core_type = #tpu.core_type<tc>, window_params = [{transform_indices = @transform_0, window_bounds = array<i64: 16, 128>}, {pipeline_mode = #tpu.pipeline_mode<synchronous>, transform_indices = @transform_1, window_bounds = array<i64: 128, 128>}, {pipeline_mode = #tpu.pipeline_mode<synchronous>, transform_indices = @transform_2, window_bounds = array<i64: 1, 128>}, {pipeline_mode = #tpu.pipeline_mode<synchronous>, transform_indices = @transform_3, window_bounds = array<i64: 128, 128>}, {pipeline_mode = #tpu.pipeline_mode<synchronous>, transform_indices = @transform_4, window_bounds = array<i64: 1, 128>}, {pipeline_mode = #tpu.pipeline_mode<synchronous>, transform_indices = @transform_5, window_bounds = array<i64: 128, 128>}, {pipeline_mode = #tpu.pipeline_mode<synchronous>, transform_indices = @transform_6, window_bounds = array<i64: 1, 128>}, {transform_indices = @transform_7, window_bounds = array<i64: 16, 128>}]} {
    %c0 = arith.constant 0 : index
    %c0_0 = arith.constant 0 : index
    %0 = vector.load %arg1[%c0, %c0_0] : memref<16x128xf32, #tpu.memory_space<vmem>>, vector<16x128xf32>
    %1 = arith.truncf %0 : vector<16x128xf32> to vector<16x128xbf16>
    %c0_1 = arith.constant 0 : index
    %c0_2 = arith.constant 0 : index
    %2 = vector.load %arg2[%c0_1, %c0_2] : memref<128x128xbf16, #tpu.memory_space<vmem>>, vector<128x128xbf16>
    %cst = arith.constant dense<0.000000e+00> : vector<16x128xf32>
    %3 = tpu.matmul %1, %2, %cst {dimension_numbers = #tpu.dot_dimension_numbers<[1], [0], [0], [1], [0, 0, 1, 1], [], []>} : vector<16x128xbf16>, vector<128x128xbf16>, vector<16x128xf32> -> vector<16x128xf32>
    %c0_3 = arith.constant 0 : index
    %c0_4 = arith.constant 0 : index
    %4 = vector.load %arg3[%c0_3, %c0_4] : memref<1x128xf32, #tpu.memory_space<vmem>>, vector<1x128xf32>
    %5 = vector.broadcast %4 : vector<1x128xf32> to vector<16x128xf32>
    %6 = arith.addf %3, %5 : vector<16x128xf32>
    %cst_5 = arith.constant 0.000000e+00 : f32
    %7 = vector.broadcast %cst_5 : f32 to vector<16x128xf32>
    %8 = arith.maximumf %6, %7 : vector<16x128xf32>
    %9 = arith.truncf %8 : vector<16x128xf32> to vector<16x128xbf16>
    %c0_6 = arith.constant 0 : index
    %c0_7 = arith.constant 0 : index
    %10 = vector.load %arg4[%c0_6, %c0_7] : memref<128x128xbf16, #tpu.memory_space<vmem>>, vector<128x128xbf16>
    %cst_8 = arith.constant dense<0.000000e+00> : vector<16x128xf32>
    %11 = tpu.matmul %9, %10, %cst_8 {dimension_numbers = #tpu.dot_dimension_numbers<[1], [0], [0], [1], [0, 0, 1, 1], [], []>} : vector<16x128xbf16>, vector<128x128xbf16>, vector<16x128xf32> -> vector<16x128xf32>
    %c0_9 = arith.constant 0 : index
    %c0_10 = arith.constant 0 : index
    %12 = vector.load %arg5[%c0_9, %c0_10] : memref<1x128xf32, #tpu.memory_space<vmem>>, vector<1x128xf32>
    %13 = vector.broadcast %12 : vector<1x128xf32> to vector<16x128xf32>
    %14 = arith.addf %11, %13 : vector<16x128xf32>
    %cst_11 = arith.constant 0.000000e+00 : f32
    %15 = vector.broadcast %cst_11 : f32 to vector<16x128xf32>
    %16 = arith.maximumf %14, %15 : vector<16x128xf32>
    %17 = arith.truncf %16 : vector<16x128xf32> to vector<16x128xbf16>
    %c0_12 = arith.constant 0 : index
    %c0_13 = arith.constant 0 : index
    %18 = vector.load %arg6[%c0_12, %c0_13] : memref<128x128xbf16, #tpu.memory_space<vmem>>, vector<128x128xbf16>
    %cst_14 = arith.constant dense<0.000000e+00> : vector<16x128xf32>
    %19 = tpu.matmul %17, %18, %cst_14 {dimension_numbers = #tpu.dot_dimension_numbers<[1], [0], [0], [1], [0, 0, 1, 1], [], []>} : vector<16x128xbf16>, vector<128x128xbf16>, vector<16x128xf32> -> vector<16x128xf32>
    %c0_15 = arith.constant 0 : index
    %c0_16 = arith.constant 0 : index
    %20 = vector.load %arg7[%c0_15, %c0_16] : memref<1x128xf32, #tpu.memory_space<vmem>>, vector<1x128xf32>
    %21 = vector.broadcast %20 : vector<1x128xf32> to vector<16x128xf32>
    %22 = arith.addf %19, %21 : vector<16x128xf32>
    %23 = arith.truncf %22 : vector<16x128xf32> to vector<16x128xbf16>
    %c0_17 = arith.constant 0 : index
    %c0_18 = arith.constant 0 : index
    %24 = vector.load %arg8[%c0_17, %c0_18] : memref<16x128xbf16, #tpu.memory_space<vmem>>, vector<16x128xbf16>
    tpu.vector_store %arg8[%c0_17, %c0_18], %23 {strides = array<i32>} : memref<16x128xbf16, #tpu.memory_space<vmem>>, vector<16x128xbf16>,
    return
  }
  func.func @transform_0(%arg0: i32) -> (i32, i32) {
    %c0_i32 = arith.constant 0 : i32
    %c0_i32_0 = arith.constant 0 : i32
    return %arg0, %c0_i32 : i32, i32
  }
  func.func @transform_1(%arg0: i32) -> (i32, i32) {
    %c0_i32 = arith.constant 0 : i32
    %c0_i32_0 = arith.constant 0 : i32
    %c0_i32_1 = arith.constant 0 : i32
    return %c0_i32, %c0_i32_0 : i32, i32
  }
  func.func @transform_2(%arg0: i32) -> (i32, i32) {
    %c0_i32 = arith.constant 0 : i32
    %c0_i32_0 = arith.constant 0 : i32
    %c0_i32_1 = arith.constant 0 : i32
    return %c0_i32, %c0_i32_0 : i32, i32
  }
  func.func @transform_3(%arg0: i32) -> (i32, i32) {
    %c0_i32 = arith.constant 0 : i32
    %c0_i32_0 = arith.constant 0 : i32
    %c0_i32_1 = arith.constant 0 : i32
    return %c0_i32, %c0_i32_0 : i32, i32
  }
  func.func @transform_4(%arg0: i32) -> (i32, i32) {
    %c0_i32 = arith.constant 0 : i32
    %c0_i32_0 = arith.constant 0 : i32
    %c0_i32_1 = arith.constant 0 : i32
    return %c0_i32, %c0_i32_0 : i32, i32
  }
  func.func @transform_5(%arg0: i32) -> (i32, i32) {
    %c0_i32 = arith.constant 0 : i32
    %c0_i32_0 = arith.constant 0 : i32
    %c0_i32_1 = arith.constant 0 : i32
    return %c0_i32, %c0_i32_0 : i32, i32
  }
  func.func @transform_6(%arg0: i32) -> (i32, i32) {
    %c0_i32 = arith.constant 0 : i32
    %c0_i32_0 = arith.constant 0 : i32
    %c0_i32_1 = arith.constant 0 : i32
    return %c0_i32, %c0_i32_0 : i32, i32
  }
  func.func @transform_7(%arg0: i32) -> (i32, i32) {
    %c0_i32 = arith.constant 0 : i32
    %c0_i32_0 = arith.constant 0 : i32
    return %arg0, %c0_i32 : i32, i32
  }
}

module attributes {stable_mosaic.version = 11 : i64} {
  func.func @mlp_kernel(%arg0: i32, %arg1: memref<16x128xf32, #tpu.memory_space<vmem>>, %arg2: memref<128x128xbf16, #tpu.memory_space<vmem>>, %arg3: memref<1x128xf32, #tpu.memory_space<vmem>>, %arg4: memref<128x128xbf16, #tpu.memory_space<vmem>>, %arg5: memref<1x128xf32, #tpu.memory_space<vmem>>, %arg6: memref<128x128xbf16, #tpu.memory_space<vmem>>, %arg7: memref<1x128xf32, #tpu.memory_space<vmem>>, %arg8: memref<16x128xbf16, #tpu.memory_space<vmem>>) attributes {dimension_semantics = [#tpu.dimension_semantics<parallel>], iteration_bounds = array<i64: 1>, scalar_prefetch = 0 : i64, scratch_operands = 0 : i64, tpu.core_type = #tpu.core_type<tc>, window_params = [{transform_indices = @transform_0, window_bounds = array<i64: 16, 128>}, {pipeline_mode = #tpu.pipeline_mode<synchronous>, transform_indices = @transform_1, window_bounds = array<i64: 128, 128>}, {pipeline_mode = #tpu.pipeline_mode<synchronous>, transform_indices = @transform_2, window_bounds = array<i64: 1, 128>}, {pipeline_mode = #tpu.pipeline_mode<synchronous>, transform_indices = @transform_3, window_bounds = array<i64: 128, 128>}, {pipeline_mode = #tpu.pipeline_mode<synchronous>, transform_indices = @transform_4, window_bounds = array<i64: 1, 128>}, {pipeline_mode = #tpu.pipeline_mode<synchronous>, transform_indices = @transform_5, window_bounds = array<i64: 128, 128>}, {pipeline_mode = #tpu.pipeline_mode<synchronous>, transform_indices = @transform_6, window_bounds = array<i64: 1, 128>}, {transform_indices = @transform_7, window_bounds = array<i64: 16, 128>}]} {
    %c0 = arith.constant 0 : index
    %c0_0 = arith.constant 0 : index
    %0 = vector.load %arg1[%c0, %c0_0] : memref<16x128xf32, #tpu.memory_space<vmem>>, vector<16x128xf32>
    %1 = arith.truncf %0 : vector<16x128xf32> to vector<16x128xbf16>
    %c0_1 = arith.constant 0 : index
    %c0_2 = arith.constant 0 : index
    %2 = vector.load %arg2[%c0_1, %c0_2] : memref<128x128xbf16, #tpu.memory_space<vmem>>, vector<128x128xbf16>
    %cst = arith.constant dense<0.000000e+00> : vector<16x128xf32>
    %3 = tpu.matmul %1, %2, %cst {dimension_numbers = #tpu.dot_dimension_numbers<[1], [0], [0], [1], [0, 0, 1, 1], [], []>} : vector<16x128xbf16>, vector<128x128xbf16>, vector<16x128xf32> -> vector<16x128xf32>
    %c0_3 = arith.constant 0 : index
    %c0_4 = arith.constant 0 : index
    %4 = vector.load %arg3[%c0_3, %c0_4] : memref<1x128xf32, #tpu.memory_space<vmem>>, vector<1x128xf32>
    %5 = vector.broadcast %4 : vector<1x128xf32> to vector<16x128xf32>
    %6 = arith.addf %3, %5 : vector<16x128xf32>
    %cst_5 = arith.constant 0.000000e+00 : f32
    %7 = vector.broadcast %cst_5 : f32 to vector<16x128xf32>
    %8 = arith.maximumf %6, %7 : vector<16x128xf32>
    %9 = arith.truncf %8 : vector<16x128xf32> to vector<16x128xbf16>
    %c0_6 = arith.constant 0 : index
    %c0_7 = arith.constant 0 : index
    %10 = vector.load %arg4[%c0_6, %c0_7] : memref<128x128xbf16, #tpu.memory_space<vmem>>, vector<128x128xbf16>
    %cst_8 = arith.constant dense<0.000000e+00> : vector<16x128xf32>
    %11 = tpu.matmul %9, %10, %cst_8 {dimension_numbers = #tpu.dot_dimension_numbers<[1], [0], [0], [1], [0, 0, 1, 1], [], []>} : vector<16x128xbf16>, vector<128x128xbf16>, vector<16x128xf32> -> vector<16x128xf32>
    %c0_9 = arith.constant 0 : index
    %c0_10 = arith.constant 0 : index
    %12 = vector.load %arg5[%c0_9, %c0_10] : memref<1x128xf32, #tpu.memory_space<vmem>>, vector<1x128xf32>
    %13 = vector.broadcast %12 : vector<1x128xf32> to vector<16x128xf32>
    %14 = arith.addf %11, %13 : vector<16x128xf32>
    %cst_11 = arith.constant 0.000000e+00 : f32
    %15 = vector.broadcast %cst_11 : f32 to vector<16x128xf32>
    %16 = arith.maximumf %14, %15 : vector<16x128xf32>
    %17 = arith.truncf %16 : vector<16x128xf32> to vector<16x128xbf16>
    %c0_12 = arith.constant 0 : index
    %c0_13 = arith.constant 0 : index
    %18 = vector.load %arg6[%c0_12, %c0_13] : memref<128x128xbf16, #tpu.memory_space<vmem>>, vector<128x128xbf16>
    %cst_14 = arith.constant dense<0.000000e+00> : vector<16x128xf32>
    %19 = tpu.matmul %17, %18, %cst_14 {dimension_numbers = #tpu.dot_dimension_numbers<[1], [0], [0], [1], [0, 0, 1, 1], [], []>} : vector<16x128xbf16>, vector<128x128xbf16>, vector<16x128xf32> -> vector<16x128xf32>
    %c0_15 = arith.constant 0 : index
    %c0_16 = arith.constant 0 : index
    %20 = vector.load %arg7[%c0_15, %c0_16] : memref<1x128xf32, #tpu.memory_space<vmem>>, vector<1x128xf32>
    %21 = vector.broadcast %20 : vector<1x128xf32> to vector<16x128xf32>
    %22 = arith.addf %19, %21 : vector<16x128xf32>
    %23 = arith.truncf %22 : vector<16x128xf32> to vector<16x128xbf16>
    %c0_17 = arith.constant 0 : index
    %c0_18 = arith.constant 0 : index
    %24 = vector.load %arg8[%c0_17, %c0_18] : memref<16x128xbf16, #tpu.memory_space<vmem>>, vector<16x128xbf16>
    tpu.vector_store %arg8[%c0_17, %c0_18], %23 {strides = array<i32>} : memref<16x128xbf16, #tpu.memory_space<vmem>>, vector<16x128xbf16>,
    return
  }
  func.func @transform_0(%arg0: i32) -> (i32, i32) {
    %c0_i32 = arith.constant 0 : i32
    %c0_i32_0 = arith.constant 0 : i32
    return %arg0, %c0_i32 : i32, i32
  }
  func.func @transform_1(%arg0: i32) -> (i32, i32) {
    %c0_i32 = arith.constant 0 : i32
    %c0_i32_0 = arith.constant 0 : i32
    %c0_i32_1 = arith.constant 0 : i32
    return %c0_i32, %c0_i32_0 : i32, i32
  }
  func.func @transform_2(%arg0: i32) -> (i32, i32) {
    %c0_i32 = arith.constant 0 : i32
    %c0_i32_0 = arith.constant 0 : i32
    %c0_i32_1 = arith.constant 0 : i32
    return %c0_i32, %c0_i32_0 : i32, i32
  }
  func.func @transform_3(%arg0: i32) -> (i32, i32) {
    %c0_i32 = arith.constant 0 : i32
    %c0_i32_0 = arith.constant 0 : i32
    %c0_i32_1 = arith.constant 0 : i32
    return %c0_i32, %c0_i32_0 : i32, i32
  }
  func.func @transform_4(%arg0: i32) -> (i32, i32) {
    %c0_i32 = arith.constant 0 : i32
    %c0_i32_0 = arith.constant 0 : i32
    %c0_i32_1 = arith.constant 0 : i32
    return %c0_i32, %c0_i32_0 : i32, i32
  }
  func.func @transform_5(%arg0: i32) -> (i32, i32) {
    %c0_i32 = arith.constant 0 : i32
    %c0_i32_0 = arith.constant 0 : i32
    %c0_i32_1 = arith.constant 0 : i32
    return %c0_i32, %c0_i32_0 : i32, i32
  }
  func.func @transform_6(%arg0: i32) -> (i32, i32) {
    %c0_i32 = arith.constant 0 : i32
    %c0_i32_0 = arith.constant 0 : i32
    %c0_i32_1 = arith.constant 0 : i32
    return %c0_i32, %c0_i32_0 : i32, i32
  }
  func.func @transform_7(%arg0: i32) -> (i32, i32) {
    %c0_i32 = arith.constant 0 : i32
    %c0_i32_0 = arith.constant 0 : i32
    return %arg0, %c0_i32 : i32, i32
  }
}

</mosaic_0001>

<bundles_post_ra>
// kernel: tpu_custom_call.1
= control target key start
LH: loop header
LB: loop body
LE: loop exit
PB: predicated region body
PF: predicated region fallthrough
CT: control target
= control target key end

     0   :  { %12 = vsyncpa [#allocation3], 0  ;;  %s720_s0 = inlined_call_operand.hbm [shape: f32[16,128], index: 0, kind: input, shape index: {}]   ;;  %s721_s1 = inlined_call_operand.hbm [shape: bf16[128,128], index: 1, kind: input, shape index: {}]   ;;  %s722_s2 = inlined_call_operand.vmem [shape: f32[1,128], index: 2, kind: input, shape index: {}]   ;;  %s723_s3 = inlined_call_operand.hbm [shape: bf16[128,128], index: 3, kind: input, shape index: {}]   ;;  %s724_s4 = inlined_call_operand.vmem [shape: f32[1,128], index: 4, kind: input, shape index: {}]   ;;  %s725_s5 = inlined_call_operand.hbm [shape: bf16[128,128], index: 5, kind: input, shape index: {}]   ;;  %s726_s6 = inlined_call_operand.vmem [shape: f32[1,128], index: 6, kind: input, shape index: {}]   ;;  %s727_s7 = inlined_call_operand.hbm [shape: bf16[16,128], index: 7, kind: output, shape index: {}]  }
   0x1   :  { %13 = vsyncpa [#allocation6], 0 }
   0x2   :  { %14 = vsyncpa [#allocation9], 0  ;;  %s33_s26 = sshll.u32 %s721_s1, 4  ;;  %s34_s26 = int_to_ptr.hbm [resolvable:$true] %s33_s26 }
   0x3   :  { %15 = vsyncpa [#allocation4], 0  ;;  %s635_s27 = smov [#allocation5]   ;;  %s20_s8 = sshll.u32 %s720_s0, 4  ;;  %s21_s8 = int_to_ptr.hbm [resolvable:$true] %s20_s8 }
   0x4   :  { %s35_s28 = sshll.u32 %s635_s27, 4  ;;  %s636_s9 = smov 64   ;;  %s36_s28 = int_to_ptr.vmem [resolvable:$true] %s35_s28 }
   0x5   :  { %s637_s10 = smov 4   ;;  %s638_s11 = smov [#allocation2]  }
   0x6   :  { %41 = dma.hbm_to_vmem [thread:$0]  %s34_s26, 1024, %s36_s28, [#allocation6], %s636_s9, %s636_s9, %s637_s10  }
   0x7   :  { %s22_s12 = sshll.u32 %s638_s11, 4  ;;  %s639_s1 = smov 128   ;;  %s23_s12 = int_to_ptr.vmem [resolvable:$true] %s22_s12 }
   0x8   :  { %s640_s13 = smov 8   ;;  %s48_s16 = sshll.u32 %s723_s3, 4  ;;  %s49_s16 = int_to_ptr.hbm [resolvable:$true] %s48_s16 }
   0x9   :  { %28 = dma.hbm_to_vmem [thread:$0]  %s21_s8, 256, %s23_s12, [#allocation3], %s639_s1, %s639_s1, %s640_s13  }
   0xa   :  { %s641_s17 = smov [#allocation7]   ;;  %s63_s20 = sshll.u32 %s725_s5, 4  ;;  %s64_s20 = int_to_ptr.hbm [resolvable:$true] %s63_s20 }
   0xb   :  { %s50_s0 = sshll.u32 %s641_s17, 4  ;;  %s642_s21 = smov [#allocation8]   ;;  %s51_s0 = int_to_ptr.vmem [resolvable:$true] %s50_s0 }
   0xc   :  { %56 = dma.hbm_to_vmem [thread:$0]  %s49_s16, 1024, %s51_s0, [#allocation6], %s636_s9, %s636_s9, %s637_s10  }
   0xd   :  { %s65_s22 = sshll.u32 %s642_s21, 4  ;;  %s66_s22 = int_to_ptr.vmem [resolvable:$true] %s65_s22 }
   0xe   :  { %71 = dma.hbm_to_vmem [thread:$0]  %s64_s20, 1024, %s66_s22, [#allocation9], %s636_s9, %s636_s9, %s637_s10  }
   0xf   :  { %627 = dma.done.wait [#allocation3], 256  }
  0x10   :  { %628 = vsyncadd [#allocation3], 4294967040 }
  0x11   :  { %629 = dma.done.wait [#allocation6], 2048  }
  0x12   :  { %630 = vsyncadd [#allocation6], 4294965248 }
  0x13   :  { %631 = dma.done.wait [#allocation9], 1024  }
  0x14   :  { %632 = vsyncadd [#allocation9], 4294966272  ;;  %v473_v0 = vld [vmem:[#allocation5 + $0x38] sm:$0xff]  ;;  %v472_v1 = vld [vmem:[#allocation5 + $0x30] sm:$0xff]  ;;  %s643_s26 = smov [#allocation10]   ;;  %s355_s30 = sshll.u32 %s727_s7, 4  ;;  %s356_s30 = int_to_ptr.hbm [resolvable:$true] %s355_s30 }
  0x15   :  { %161 = vmatpush.bf16.msra.mxu0 %v473_v0  ;;  %v481_v2 = vld [vmem:[#allocation7 + $0x38] sm:$0xff]  ;;  %v480_v3 = vld [vmem:[#allocation7 + $0x30] sm:$0xff]  ;;  %v471_v4 = vld [vmem:[#allocation5 + $0x28] sm:$0xff]  ;;  %s353_s27 = sshll.u32 %s643_s26, 4  ;;  %s354_s27 = int_to_ptr.vmem [resolvable:$true] %s353_s27 }
  0x16   :  { %246 = vmatpush.bf16.msra.mxu1 %v481_v2  ;;  %v479_v5 = vld [vmem:[#allocation7 + $0x28] sm:$0xff]  ;;  %v470_v6 = vld [vmem:[#allocation5 + $0x20] sm:$0xff]  ;;  %v469_v8 = vld [vmem:[#allocation5 + $0x18] sm:$0xff] }
  0x17   :  { %v478_v7 = vld [vmem:[#allocation7 + $0x20] sm:$0xff]  ;;  %v468_v9 = vld [vmem:[#allocation5 + $0x10] sm:$0xff]  ;;  %v467_v10 = vld [vmem:[#allocation5 + $0x8] sm:$0xff] }
  0x18   :  { %v466_v11 = vld [vmem:[#allocation5] sm:$0xff]  ;;  %v90_v12 = vld [vmem:[#allocation2] sm:$0xff]  ;;  %v91_v13 = vld [vmem:[#allocation2 + $0x8] sm:$0xff] }
  0x19   :  { %162 = vmatpush.bf16.msra.mxu0 %v472_v1  ;;  %v92_v14 = vpack.c.bf16 %v91_v13, %v90_v12  ;;  %v477_v15 = vld [vmem:[#allocation7 + $0x18] sm:$0xff]  ;;  %v476_v16 = vld [vmem:[#allocation7 + $0x10] sm:$0xff]  ;;  %v475_v17 = vld [vmem:[#allocation7 + $0x8] sm:$0xff] }
  0x1a   :  { %247 = vmatpush.bf16.msra.mxu1 %v480_v3  ;;  %v474_v18 = vld [vmem:[#allocation7] sm:$0xff]  ;;  %v489_v19 = vld [vmem:[#allocation8 + $0x38] sm:$0xff]  ;;  %v488_v20 = vld [vmem:[#allocation8 + $0x30] sm:$0xff] }
  0x1b   :  { %331 = vmatpush.bf16.msra.mxu2 %v489_v19  ;;  %v487_v21 = vld [vmem:[#allocation8 + $0x28] sm:$0xff]  ;;  %v486_v22 = vld [vmem:[#allocation8 + $0x20] sm:$0xff]  ;;  %v504_v24 = vld [vmem:[%s722_s2] ss:$0 sm:$0xff] }
  0x1c   :  { %v485_v31 = vld [vmem:[#allocation8 + $0x18] sm:$0xff]  ;;  %v484_v32 = vld [vmem:[#allocation8 + $0x10] sm:$0xff]  ;;  %v483_v33 = vld [vmem:[#allocation8 + $0x8] sm:$0xff] }
  0x1d   :  { %163 = vmatpush.bf16.msra.mxu0 %v471_v4  ;;  %v482_v34 = vld [vmem:[#allocation8] sm:$0xff]  ;;  %v505_v36 = vld [vmem:[%s724_s4] ss:$0 sm:$0xff] }
  0x1e   :  { %248 = vmatpush.bf16.msra.mxu1 %v479_v5  ;;  %v506_v44 = vld [vmem:[%s726_s6] ss:$0 sm:$0xff] }
  0x1f   :  { %332 = vmatpush.bf16.msra.mxu2 %v488_v20 }
  0x21   :  { %164 = vmatpush.bf16.msra.mxu0 %v470_v6 }
  0x22   :  { %249 = vmatpush.bf16.msra.mxu1 %v478_v7 }
  0x23   :  { %333 = vmatpush.bf16.msra.mxu2 %v487_v21 }
  0x25   :  { %165 = vmatpush.bf16.msra.mxu0 %v469_v8 }
  0x26   :  { %250 = vmatpush.bf16.msra.mxu1 %v477_v15 }
  0x27   :  { %334 = vmatpush.bf16.msra.mxu2 %v486_v22 }
  0x29   :  { %166 = vmatpush.bf16.msra.mxu0 %v468_v9 }
  0x2a   :  { %251 = vmatpush.bf16.msra.mxu1 %v476_v16 }
  0x2b   :  { %335 = vmatpush.bf16.msra.mxu2 %v485_v31 }
  0x2d   :  { %167 = vmatpush.bf16.msra.mxu0 %v467_v10 }
  0x2e   :  { %252 = vmatpush.bf16.msra.mxu1 %v475_v17 }
  0x2f   :  { %336 = vmatpush.bf16.msra.mxu2 %v484_v32 }
  0x31   :  { %168 = vmatpush.bf16.msra.mxu0 %v466_v11 }
  0x32   :  { %253 = vmatpush.bf16.msra.mxu1 %v474_v18 }
  0x33   :  { %337 = vmatpush.bf16.msra.mxu2 %v483_v33 }
  0x34   :  { %169 = vmatmul.bf16.vlgmr.msra.gmra.mxu0 %v92_v14 }
  0x37   :  { %338 = vmatpush.bf16.msra.mxu2 %v482_v34 }
  0xb1   :  { %v170_v23 = vpop.f32.mrf.mxu0 }
  0xb2   :  { %v171_v25 = vadd.f32 %v504_v24, %v170_v23 }
  0xb4   :  { %v175_v28 = vmax.f32 %v171_v25, 0.0 }
  0xb9   :  { %v172_v26 = vpop.f32.mrf.mxu0 }
  0xba   :  { %v173_v27 = vadd.f32 %v504_v24, %v172_v26 }
  0xbc   :  { %v176_v29 = vmax.f32 %v173_v27, 0.0 }
  0xbe   :  { %v177_v30 = vpack.c.bf16 %v176_v29, %v175_v28 }
  0xc0   :  { %254 = vmatmul.bf16.vlgmr.msra.gmra.mxu1 %v177_v30 }
 0x13d   :  { %v255_v35 = vpop.f32.mrf.mxu1 }
 0x13e   :  { %v256_v37 = vadd.f32 %v505_v36, %v255_v35 }
 0x140   :  { %v260_v40 = vmax.f32 %v256_v37, 0.0 }
 0x145   :  { %v257_v38 = vpop.f32.mrf.mxu1 }
 0x146   :  { %v258_v39 = vadd.f32 %v505_v36, %v257_v38 }
 0x148   :  { %v261_v41 = vmax.f32 %v258_v39, 0.0 }
 0x14a   :  { %v262_v42 = vpack.c.bf16 %v261_v41, %v260_v40 }
 0x14c   :  { %339 = vmatmul.bf16.vlgmr.msra.gmra.mxu2 %v262_v42 }
 0x1cf   :  { %v340_v43 = vpop.f32.mrf.mxu2 }
 0x1d0   :  { %v341_v46 = vadd.f32 %v506_v44, %v340_v43 }
 0x1d7   :  { %v342_v45 = vpop.f32.mrf.mxu2 }
 0x1d8   :  { %v343_v47 = vadd.f32 %v506_v44, %v342_v45 }
 0x1da   :  { %v493_v48 = vpack.c.bf16 %v343_v47, %v341_v46 }
 0x1dc   :  { %494 = vst [vmem:[#allocation10] sm:$0xff] %v493_v48  }
 0x1dd   :  { %361 = dma.vmem_to_hbm [thread:$0]  %s354_s27, 128, %s356_s30, [#allocation4], %s636_s9, %s636_s9, %s637_s10  }
 0x1de   :  { %633 = dma.done.wait [#allocation4], 128  }
 0x1df   :  { %634 = vsyncadd [#allocation4], 4294967168 }
 0x1e0   :  { %366 = vsyncpa [#allocation3], 1 }
 0x1e1   :  { %367 = vsyncpa [#allocation6], 1 }
 0x1e2   :  { %368 = vsyncpa [#allocation9], 1 }
 0x1e3   :  { %369 = vsyncpa [#allocation4], 1 }

// kernel: tpu_custom_call.1
= control target key start
LH: loop header
LB: loop body
LE: loop exit
PB: predicated region body
PF: predicated region fallthrough
CT: control target
= control target key end

     0   :  { %12 = vsyncpa [#allocation3], 0  ;;  %s720_s0 = inlined_call_operand.hbm [shape: f32[16,128], index: 0, kind: input, shape index: {}]   ;;  %s721_s1 = inlined_call_operand.hbm [shape: bf16[128,128], index: 1, kind: input, shape index: {}]   ;;  %s722_s2 = inlined_call_operand.vmem [shape: f32[1,128], index: 2, kind: input, shape index: {}]   ;;  %s723_s3 = inlined_call_operand.hbm [shape: bf16[128,128], index: 3, kind: input, shape index: {}]   ;;  %s724_s4 = inlined_call_operand.vmem [shape: f32[1,128], index: 4, kind: input, shape index: {}]   ;;  %s725_s5 = inlined_call_operand.hbm [shape: bf16[128,128], index: 5, kind: input, shape index: {}]   ;;  %s726_s6 = inlined_call_operand.vmem [shape: f32[1,128], index: 6, kind: input, shape index: {}]   ;;  %s727_s7 = inlined_call_operand.hbm [shape: bf16[16,128], index: 7, kind: output, shape index: {}]  }
   0x1   :  { %13 = vsyncpa [#allocation6], 0 }
   0x2   :  { %14 = vsyncpa [#allocation9], 0  ;;  %s33_s26 = sshll.u32 %s721_s1, 4  ;;  %s34_s26 = int_to_ptr.hbm [resolvable:$true] %s33_s26 }
   0x3   :  { %15 = vsyncpa [#allocation4], 0  ;;  %s635_s27 = smov [#allocation5]   ;;  %s20_s8 = sshll.u32 %s720_s0, 4  ;;  %s21_s8 = int_to_ptr.hbm [resolvable:$true] %s20_s8 }
   0x4   :  { %s35_s28 = sshll.u32 %s635_s27, 4  ;;  %s636_s9 = smov 64   ;;  %s36_s28 = int_to_ptr.vmem [resolvable:$true] %s35_s28 }
   0x5   :  { %s637_s10 = smov 4   ;;  %s638_s11 = smov [#allocation2]  }
   0x6   :  { %41 = dma.hbm_to_vmem [thread:$0]  %s34_s26, 1024, %s36_s28, [#allocation6], %s636_s9, %s636_s9, %s637_s10  }
   0x7   :  { %s22_s12 = sshll.u32 %s638_s11, 4  ;;  %s639_s1 = smov 128   ;;  %s23_s12 = int_to_ptr.vmem [resolvable:$true] %s22_s12 }
   0x8   :  { %s640_s13 = smov 8   ;;  %s48_s16 = sshll.u32 %s723_s3, 4  ;;  %s49_s16 = int_to_ptr.hbm [resolvable:$true] %s48_s16 }
   0x9   :  { %28 = dma.hbm_to_vmem [thread:$0]  %s21_s8, 256, %s23_s12, [#allocation3], %s639_s1, %s639_s1, %s640_s13  }
   0xa   :  { %s641_s17 = smov [#allocation7]   ;;  %s63_s20 = sshll.u32 %s725_s5, 4  ;;  %s64_s20 = int_to_ptr.hbm [resolvable:$true] %s63_s20 }
   0xb   :  { %s50_s0 = sshll.u32 %s641_s17, 4  ;;  %s642_s21 = smov [#allocation8]   ;;  %s51_s0 = int_to_ptr.vmem [resolvable:$true] %s50_s0 }
   0xc   :  { %56 = dma.hbm_to_vmem [thread:$0]  %s49_s16, 1024, %s51_s0, [#allocation6], %s636_s9, %s636_s9, %s637_s10  }
   0xd   :  { %s65_s22 = sshll.u32 %s642_s21, 4  ;;  %s66_s22 = int_to_ptr.vmem [resolvable:$true] %s65_s22 }
   0xe   :  { %71 = dma.hbm_to_vmem [thread:$0]  %s64_s20, 1024, %s66_s22, [#allocation9], %s636_s9, %s636_s9, %s637_s10  }
   0xf   :  { %627 = dma.done.wait [#allocation3], 256  }
  0x10   :  { %628 = vsyncadd [#allocation3], 4294967040 }
  0x11   :  { %629 = dma.done.wait [#allocation6], 2048  }
  0x12   :  { %630 = vsyncadd [#allocation6], 4294965248 }
  0x13   :  { %631 = dma.done.wait [#allocation9], 1024  }
  0x14   :  { %632 = vsyncadd [#allocation9], 4294966272  ;;  %v473_v0 = vld [vmem:[#allocation5 + $0x38] sm:$0xff]  ;;  %v472_v1 = vld [vmem:[#allocation5 + $0x30] sm:$0xff]  ;;  %s643_s26 = smov [#allocation10]   ;;  %s355_s30 = sshll.u32 %s727_s7, 4  ;;  %s356_s30 = int_to_ptr.hbm [resolvable:$true] %s355_s30 }
  0x15   :  { %161 = vmatpush.bf16.msra.mxu0 %v473_v0  ;;  %v481_v2 = vld [vmem:[#allocation7 + $0x38] sm:$0xff]  ;;  %v480_v3 = vld [vmem:[#allocation7 + $0x30] sm:$0xff]  ;;  %v471_v4 = vld [vmem:[#allocation5 + $0x28] sm:$0xff]  ;;  %s353_s27 = sshll.u32 %s643_s26, 4  ;;  %s354_s27 = int_to_ptr.vmem [resolvable:$true] %s353_s27 }
  0x16   :  { %246 = vmatpush.bf16.msra.mxu1 %v481_v2  ;;  %v479_v5 = vld [vmem:[#allocation7 + $0x28] sm:$0xff]  ;;  %v470_v6 = vld [vmem:[#allocation5 + $0x20] sm:$0xff]  ;;  %v469_v8 = vld [vmem:[#allocation5 + $0x18] sm:$0xff] }
  0x17   :  { %v478_v7 = vld [vmem:[#allocation7 + $0x20] sm:$0xff]  ;;  %v468_v9 = vld [vmem:[#allocation5 + $0x10] sm:$0xff]  ;;  %v467_v10 = vld [vmem:[#allocation5 + $0x8] sm:$0xff] }
  0x18   :  { %v466_v11 = vld [vmem:[#allocation5] sm:$0xff]  ;;  %v90_v12 = vld [vmem:[#allocation2] sm:$0xff]  ;;  %v91_v13 = vld [vmem:[#allocation2 + $0x8] sm:$0xff] }
  0x19   :  { %162 = vmatpush.bf16.msra.mxu0 %v472_v1  ;;  %v92_v14 = vpack.c.bf16 %v91_v13, %v90_v12  ;;  %v477_v15 = vld [vmem:[#allocation7 + $0x18] sm:$0xff]  ;;  %v476_v16 = vld [vmem:[#allocation7 + $0x10] sm:$0xff]  ;;  %v475_v17 = vld [vmem:[#allocation7 + $0x8] sm:$0xff] }
  0x1a   :  { %247 = vmatpush.bf16.msra.mxu1 %v480_v3  ;;  %v474_v18 = vld [vmem:[#allocation7] sm:$0xff]  ;;  %v489_v19 = vld [vmem:[#allocation8 + $0x38] sm:$0xff]  ;;  %v488_v20 = vld [vmem:[#allocation8 + $0x30] sm:$0xff] }
  0x1b   :  { %331 = vmatpush.bf16.msra.mxu2 %v489_v19  ;;  %v487_v21 = vld [vmem:[#allocation8 + $0x28] sm:$0xff]  ;;  %v486_v22 = vld [vmem:[#allocation8 + $0x20] sm:$0xff]  ;;  %v504_v24 = vld [vmem:[%s722_s2] ss:$0 sm:$0xff] }
  0x1c   :  { %v485_v31 = vld [vmem:[#allocation8 + $0x18] sm:$0xff]  ;;  %v484_v32 = vld [vmem:[#allocation8 + $0x10] sm:$0xff]  ;;  %v483_v33 = vld [vmem:[#allocation8 + $0x8] sm:$0xff] }
  0x1d   :  { %163 = vmatpush.bf16.msra.mxu0 %v471_v4  ;;  %v482_v34 = vld [vmem:[#allocation8] sm:$0xff]  ;;  %v505_v36 = vld [vmem:[%s724_s4] ss:$0 sm:$0xff] }
  0x1e   :  { %248 = vmatpush.bf16.msra.mxu1 %v479_v5  ;;  %v506_v44 = vld [vmem:[%s726_s6] ss:$0 sm:$0xff] }
  0x1f   :  { %332 = vmatpush.bf16.msra.mxu2 %v488_v20 }
  0x21   :  { %164 = vmatpush.bf16.msra.mxu0 %v470_v6 }
  0x22   :  { %249 = vmatpush.bf16.msra.mxu1 %v478_v7 }
  0x23   :  { %333 = vmatpush.bf16.msra.mxu2 %v487_v21 }
  0x25   :  { %165 = vmatpush.bf16.msra.mxu0 %v469_v8 }
  0x26   :  { %250 = vmatpush.bf16.msra.mxu1 %v477_v15 }
  0x27   :  { %334 = vmatpush.bf16.msra.mxu2 %v486_v22 }
  0x29   :  { %166 = vmatpush.bf16.msra.mxu0 %v468_v9 }
  0x2a   :  { %251 = vmatpush.bf16.msra.mxu1 %v476_v16 }
  0x2b   :  { %335 = vmatpush.bf16.msra.mxu2 %v485_v31 }
  0x2d   :  { %167 = vmatpush.bf16.msra.mxu0 %v467_v10 }
  0x2e   :  { %252 = vmatpush.bf16.msra.mxu1 %v475_v17 }
  0x2f   :  { %336 = vmatpush.bf16.msra.mxu2 %v484_v32 }
  0x31   :  { %168 = vmatpush.bf16.msra.mxu0 %v466_v11 }
  0x32   :  { %253 = vmatpush.bf16.msra.mxu1 %v474_v18 }
  0x33   :  { %337 = vmatpush.bf16.msra.mxu2 %v483_v33 }
  0x34   :  { %169 = vmatmul.bf16.vlgmr.msra.gmra.mxu0 %v92_v14 }
  0x37   :  { %338 = vmatpush.bf16.msra.mxu2 %v482_v34 }
  0xb1   :  { %v170_v23 = vpop.f32.mrf.mxu0 }
  0xb2   :  { %v171_v25 = vadd.f32 %v504_v24, %v170_v23 }
  0xb4   :  { %v175_v28 = vmax.f32 %v171_v25, 0.0 }
  0xb9   :  { %v172_v26 = vpop.f32.mrf.mxu0 }
  0xba   :  { %v173_v27 = vadd.f32 %v504_v24, %v172_v26 }
  0xbc   :  { %v176_v29 = vmax.f32 %v173_v27, 0.0 }
  0xbe   :  { %v177_v30 = vpack.c.bf16 %v176_v29, %v175_v28 }
  0xc0   :  { %254 = vmatmul.bf16.vlgmr.msra.gmra.mxu1 %v177_v30 }
 0x13d   :  { %v255_v35 = vpop.f32.mrf.mxu1 }
 0x13e   :  { %v256_v37 = vadd.f32 %v505_v36, %v255_v35 }
 0x140   :  { %v260_v40 = vmax.f32 %v256_v37, 0.0 }
 0x145   :  { %v257_v38 = vpop.f32.mrf.mxu1 }
 0x146   :  { %v258_v39 = vadd.f32 %v505_v36, %v257_v38 }
 0x148   :  { %v261_v41 = vmax.f32 %v258_v39, 0.0 }
 0x14a   :  { %v262_v42 = vpack.c.bf16 %v261_v41, %v260_v40 }
 0x14c   :  { %339 = vmatmul.bf16.vlgmr.msra.gmra.mxu2 %v262_v42 }
 0x1cf   :  { %v340_v43 = vpop.f32.mrf.mxu2 }
 0x1d0   :  { %v341_v46 = vadd.f32 %v506_v44, %v340_v43 }
 0x1d7   :  { %v342_v45 = vpop.f32.mrf.mxu2 }
 0x1d8   :  { %v343_v47 = vadd.f32 %v506_v44, %v342_v45 }
 0x1da   :  { %v493_v48 = vpack.c.bf16 %v343_v47, %v341_v46 }
 0x1dc   :  { %494 = vst [vmem:[#allocation10] sm:$0xff] %v493_v48  }
 0x1dd   :  { %361 = dma.vmem_to_hbm [thread:$0]  %s354_s27, 128, %s356_s30, [#allocation4], %s636_s9, %s636_s9, %s637_s10  }
 0x1de   :  { %633 = dma.done.wait [#allocation4], 128  }
 0x1df   :  { %634 = vsyncadd [#allocation4], 4294967168 }
 0x1e0   :  { %366 = vsyncpa [#allocation3], 1 }
 0x1e1   :  { %367 = vsyncpa [#allocation6], 1 }
 0x1e2   :  { %368 = vsyncpa [#allocation9], 1 }
 0x1e3   :  { %369 = vsyncpa [#allocation4], 1 }

</bundles_post_ra>
